<compile_context>
chip_gen: v7x
topology: tpu7x:2x2x1
jax: 0.10.0
libtpu: 0.0.40
codegen_flags: <defaults>
</compile_context>

<pallas_src>
import functools

import numpy as np
import jax
import jax.numpy as jnp
from jax.experimental import pallas as pl
from jax.experimental.pallas import tpu as pltpu


def _pos_enc_kernel(inv_freq_ref, phase_ref, x_ref, o_ref, *, seq_len):
    # x_ref / o_ref block shape: (row_tile, D)
    # inv_freq_ref / phase_ref : (1, D), resident across the whole grid.
    tr, _ = x_ref.shape
    row0 = pl.program_id(0) * tr

    # Global row index of each row in this tile -> sequence position.
    row = jax.lax.broadcasted_iota(jnp.int32, (tr, 1), 0) + row0
    pos = (row % seq_len).astype(jnp.float32)                 # (tr, 1)

    # angle[r, j] = pos[r] * inv_freq[j] + phase[j]; cos == sin(.+pi/2),
    # so a single sin per element covers both even and odd dims.
    angle = pos * inv_freq_ref[...] + phase_ref[...]          # (tr, D)
    pe = jnp.sin(angle)                                       # one EUP op / elem

    o_ref[...] = (x_ref[...].astype(jnp.float32) + pe).astype(o_ref.dtype)


def _pick_row_tile(rows, d, itemsize, target_block_bytes):
    """Largest row tile (multiple of 8, divides rows) within the VMEM budget."""
    if rows * d * itemsize <= target_block_bytes:
        return rows
    max_rows = max(8, target_block_bytes // max(1, d * itemsize))
    tile = None
    cand = 8
    limit = min(rows, max_rows)
    while cand <= limit:
        if rows % cand == 0:
            tile = cand
        cand += 8
    # Fallback (rows not a multiple of 8): full rows equals the array dim,
    # which is always a legal block shape.
    return tile if tile is not None else rows


def positional_encoding(x, *, row_tile=None, target_block_bytes=4 << 20):
    """x: (B, S, D) float array. Returns x + sinusoidal PE, same shape/dtype."""
    B, S, D = x.shape
    assert D % 2 == 0, "embed_dim must be even (as in the PyTorch module)"

    R = B * S
    itemsize = jnp.dtype(x.dtype).itemsize
    if row_tile is None:
        row_tile = _pick_row_tile(R, D, itemsize, target_block_bytes)
    assert R % row_tile == 0, "row_tile must divide B*S"

    # Host-side per-dim constants (one exp per dim, done once, outside kernel).
    j = np.arange(D)
    i_s = (2 * (j // 2)).astype(np.float32)                      # = 2k for dims 2k, 2k+1
    inv_freq = np.exp(-(i_s / np.float32(D)) * np.float32(np.log(10000.0)))
    phase = (j % 2).astype(np.float32) * np.float32(np.pi / 2.0)  # 0 for sin, pi/2 for cos
    inv_freq = jnp.asarray(inv_freq.reshape(1, D), dtype=jnp.float32)
    phase = jnp.asarray(phase.reshape(1, D), dtype=jnp.float32)

    x2 = x.reshape(R, D)
    kernel = functools.partial(_pos_enc_kernel, seq_len=S)

    out2 = pl.pallas_call(
        kernel,
        out_shape=jax.ShapeDtypeStruct((R, D), x.dtype),
        grid_spec=pltpu.PrefetchScalarGridSpec(
            num_scalar_prefetch=0,
            grid=(R // row_tile,),
            in_specs=[
                pl.BlockSpec((1, D), lambda r: (0, 0)),           # inv_freq (resident)
                pl.BlockSpec((1, D), lambda r: (0, 0)),           # phase    (resident)
                pl.BlockSpec((row_tile, D), lambda r: (r, 0)),    # x tile
            ],
            out_specs=pl.BlockSpec((row_tile, D), lambda r: (r, 0)),
        ),
        compiler_params=pltpu.CompilerParams(
            dimension_semantics=("parallel",),   # shards the stream across TCs on v7x
        ),
    )(inv_freq, phase, x2)

    return out2.reshape(B, S, D)


def _reference(x):
    """Pure-numpy reference matching the PyTorch module exactly."""
    B, S, D = x.shape
    pe = np.zeros((1, S, D), dtype=np.float32)
    positions = np.arange(S, dtype=np.float32)[:, None]
    i_s = np.arange(0, D, 2, dtype=np.float32)
    pe[0, :, 0::2] = np.sin(positions / np.power(10000.0, i_s / D))
    pe[0, :, 1::2] = np.cos(positions / np.power(10000.0, i_s / D))
    return np.asarray(x) + pe


if __name__ == "__main__":
    key = jax.random.PRNGKey(0)
    B, S, D = 2, 8, 32  # embed_dim=32, seq=8 (<= max_len)
    x = jax.random.normal(key, (B, S, D), dtype=jnp.float32)

    out = positional_encoding(x)
    out = jax.block_until_ready(out)

    ref = _reference(x)
    assert out.shape == (B, S, D) and out.dtype == jnp.float32
    np.testing.assert_allclose(np.asarray(out), ref, rtol=1e-5, atol=1e-5)
    print("KERNEL_OK")
</pallas_src>

<mosaic_0001>
module attributes {stable_mosaic.version = 11 : i64} {
  func.func @_pos_enc_kernel(%arg0: i32, %arg1: memref<1x32xf32, #tpu.memory_space<vmem>>, %arg2: memref<1x32xf32, #tpu.memory_space<vmem>>, %arg3: memref<16x32xf32, #tpu.memory_space<vmem>>, %arg4: memref<16x32xf32, #tpu.memory_space<vmem>>) attributes {dimension_semantics = [#tpu.dimension_semantics<parallel>], iteration_bounds = array<i64: 1>, scalar_prefetch = 0 : i64, scratch_operands = 0 : i64, tpu.core_type = #tpu.core_type<tc>, window_params = [{pipeline_mode = #tpu.pipeline_mode<synchronous>, transform_indices = @transform_0, window_bounds = array<i64: 1, 32>}, {pipeline_mode = #tpu.pipeline_mode<synchronous>, transform_indices = @transform_1, window_bounds = array<i64: 1, 32>}, {transform_indices = @transform_2, window_bounds = array<i64: 16, 32>}, {transform_indices = @transform_3, window_bounds = array<i64: 16, 32>}]} {
    %c16_i32 = arith.constant 16 : i32
    %0 = arith.muli %arg0, %c16_i32 : i32
    %1 = tpu.iota {dimensions = array<i32: 0>} : vector<16x1xi32>
    %2 = vector.broadcast %0 : i32 to vector<16x1xi32>
    %3 = arith.addi %1, %2 : vector<16x1xi32>
    %c8_i32 = arith.constant 8 : i32
    %c0_i32 = arith.constant 0 : i32
    %4 = arith.cmpi eq, %c8_i32, %c0_i32 : i32
    %c1_i32 = arith.constant 1 : i32
    %5 = arith.select %4, %c1_i32, %c8_i32 : i32
    %6 = vector.broadcast %5 : i32 to vector<16x1xi32>
    %7 = arith.remsi %3, %6 : vector<16x1xi32>
    %c0_i32_0 = arith.constant 0 : i32
    %8 = vector.broadcast %c0_i32_0 : i32 to vector<16x1xi32>
    %9 = arith.cmpi ne, %7, %8 : vector<16x1xi32>
    %c0_i32_1 = arith.constant 0 : i32
    %10 = vector.broadcast %c0_i32_1 : i32 to vector<16x1xi32>
    %11 = arith.cmpi slt, %7, %10 : vector<16x1xi32>
    %c0_i32_2 = arith.constant 0 : i32
    %12 = arith.cmpi slt, %5, %c0_i32_2 : i32
    %13 = vector.broadcast %12 : i1 to vector<16x1xi1>
    %14 = vector.broadcast %13 : vector<16x1xi1> to vector<16x1xi1>
    %15 = arith.xori %11, %14 : vector<16x1xi1>
    %16 = arith.andi %15, %9 : vector<16x1xi1>
    %17 = vector.broadcast %5 : i32 to vector<16x1xi32>
    %18 = arith.addi %7, %17 : vector<16x1xi32>
    %19 = arith.select %16, %18, %7 : vector<16x1xi1>, vector<16x1xi32>
    %20 = arith.sitofp %19 : vector<16x1xi32> to vector<16x1xf32>
    %c0 = arith.constant 0 : index
    %c0_3 = arith.constant 0 : index
    %21 = vector.load %arg1[%c0, %c0_3] : memref<1x32xf32, #tpu.memory_space<vmem>>, vector<1x32xf32>
    %22 = vector.broadcast %20 : vector<16x1xf32> to vector<16x32xf32>
    %23 = vector.broadcast %21 : vector<1x32xf32> to vector<16x32xf32>
    %24 = arith.mulf %22, %23 : vector<16x32xf32>
    %c0_4 = arith.constant 0 : index
    %c0_5 = arith.constant 0 : index
    %25 = vector.load %arg2[%c0_4, %c0_5] : memref<1x32xf32, #tpu.memory_space<vmem>>, vector<1x32xf32>
    %26 = vector.broadcast %25 : vector<1x32xf32> to vector<16x32xf32>
    %27 = arith.addf %24, %26 : vector<16x32xf32>
    %28 = math.sin %27 : vector<16x32xf32>
    %c0_6 = arith.constant 0 : index
    %c0_7 = arith.constant 0 : index
    %29 = vector.load %arg3[%c0_6, %c0_7] : memref<16x32xf32, #tpu.memory_space<vmem>>, vector<16x32xf32>
    %30 = arith.addf %29, %28 : vector<16x32xf32>
    %c0_8 = arith.constant 0 : index
    %c0_9 = arith.constant 0 : index
    %31 = vector.load %arg4[%c0_8, %c0_9] : memref<16x32xf32, #tpu.memory_space<vmem>>, vector<16x32xf32>
    tpu.vector_store %arg4[%c0_8, %c0_9], %30 {strides = array<i32>} : memref<16x32xf32, #tpu.memory_space<vmem>>, vector<16x32xf32>,
    return
  }
  func.func @transform_0(%arg0: i32) -> (i32, i32) {
    %c0_i32 = arith.constant 0 : i32
    %c0_i32_0 = arith.constant 0 : i32
    %c0_i32_1 = arith.constant 0 : i32
    return %c0_i32, %c0_i32_0 : i32, i32
  }
  func.func @transform_1(%arg0: i32) -> (i32, i32) {
    %c0_i32 = arith.constant 0 : i32
    %c0_i32_0 = arith.constant 0 : i32
    %c0_i32_1 = arith.constant 0 : i32
    return %c0_i32, %c0_i32_0 : i32, i32
  }
  func.func @transform_2(%arg0: i32) -> (i32, i32) {
    %c0_i32 = arith.constant 0 : i32
    %c0_i32_0 = arith.constant 0 : i32
    return %arg0, %c0_i32 : i32, i32
  }
  func.func @transform_3(%arg0: i32) -> (i32, i32) {
    %c0_i32 = arith.constant 0 : i32
    %c0_i32_0 = arith.constant 0 : i32
    return %arg0, %c0_i32 : i32, i32
  }
}

</mosaic_0001>

<bundles_post_ra>
// kernel: tpu_custom_call.1
= control target key start
LH: loop header
LB: loop body
LE: loop exit
PB: predicated region body
PF: predicated region fallthrough
CT: control target
= control target key end

     0   :  { %8 = vsyncpa [#allocation3], 0  ;;  %s595_s0 = inlined_call_operand.hbm [shape: f32[1,32], index: 0, kind: input, shape index: {}]   ;;  %s596_s1 = inlined_call_operand.vmem [shape: f32[1,32], index: 1, kind: input, shape index: {}]   ;;  %s597_s2 = inlined_call_operand.hbm [shape: f32[16,32], index: 2, kind: input, shape index: {}]   ;;  %s598_s3 = inlined_call_operand.hbm [shape: f32[16,32], index: 3, kind: output, shape index: {}]  }
   0x1   :  { %9 = vsyncpa [#allocation6], 0 }
   0x2   :  { %10 = vsyncpa [#allocation4], 0  ;;  %s434_s12 = smov [#allocation2]   ;;  %s435_s14 = smov [#allocation5]  }
   0x3   :  { %s17_s13 = sshll.u32 %s434_s12, 4  ;;  %s28_s15 = sshll.u32 %s435_s14, 4  ;;  %s18_s13 = int_to_ptr.vmem [resolvable:$true] %s17_s13  ;;  %s465_s15 = int_to_ptr.vmem [resolvable:$true] %s28_s15 }
   0x4   :  { %s362_s18 = scalar_lea.hbm %s595_s0, 16 }
   0x5   :  { %p363_p0 = scmp.ne.s32.totalorder %s595_s0, %s362_s18  ;;  %p366_p1 = scmp.lt.u32.totalorder %s362_s18, %s595_s0 }
   0x7   :  { %p368_p2 = pnand %p366_p1, %p363_p0 }
   0x9   :  { %371 = shalt.err (!%p368_p2)
}
   0xa   :  { %s372_s23 = scalar_lea.vmem %s18_s13, 16  ;;  %s376_s24 = scalar_lea.vmem %s18_s13, 32 }
   0xb   :  { %p373_p3 = scmp.ne.s32.totalorder %s18_s13, %s372_s23  ;;  %p377_p4 = scmp.lt.s32.totalorder %s18_s13, %s18_s13 }
   0xc   :  { %p378_p5 = scmp.lt.s32.totalorder %s376_s24, %s372_s23 }
   0xe   :  { %p379_p6 = por %p378_p5, %p377_p4 }
  0x10   :  { %p380_p7 = pnand %p379_p6, %p373_p3 }
  0x12   :  { %383 = shalt.err (!%p380_p7)
}
  0x13   :  { %20 = dma.hbm_to_vmem [thread:$0]  %s595_s0, 16, %s18_s13, [#allocation3]  }
  0x14   :  { %s384_s29 = scalar_lea.hbm %s597_s2, 256 }
  0x15   :  { %p385_p8 = scmp.ne.s32.totalorder %s597_s2, %s384_s29  ;;  %p388_p9 = scmp.lt.u32.totalorder %s384_s29, %s597_s2 }
  0x17   :  { %p390_p10 = pnand %p388_p9, %p385_p8 }
  0x19   :  { %393 = shalt.err (!%p390_p10)
}
  0x1a   :  { %s394_s7 = scalar_lea.vmem %s465_s15, 256  ;;  %p399_p12 = scmp.lt.s32.totalorder %s465_s15, %s465_s15 }
  0x1b   :  { %p395_p11 = scmp.ne.s32.totalorder %s465_s15, %s394_s7  ;;  %p400_p13 = scmp.lt.s32.totalorder %s394_s7, %s394_s7 }
  0x1d   :  { %p401_p0 = por %p400_p13, %p399_p12 }
  0x1f   :  { %p402_p1 = pnand %p401_p0, %p395_p11 }
  0x21   :  { %405 = shalt.err (!%p402_p1)
}
  0x22   :  { %s436_s0 = smov 128   ;;  %s437_s8 = smov 8  }
  0x23   :  { %34 = dma.hbm_to_vmem [thread:$0]  %s597_s2, 256, %s465_s15, [#allocation6], %s436_s0, %s436_s0, %s437_s8  }
  0x24   :  { %428 = dma.done.wait [#allocation3], 16  }
  0x25   :  { %429 = vsyncadd [#allocation3], 4294967280 }
  0x26   :  { %430 = dma.done.wait [#allocation6], 256  }
  0x27   :  { %431 = vsyncadd [#allocation6], 4294967040  ;;  %v42_v0 = vlaneseq  ;;  %v325_v6 = vld [vmem:[#allocation2] ss:$0 sm:$0xff]  ;;  %v438_v32 = vmov 683565275  }
  0x28   :  { %v326_v7 = vld [vmem:[%s596_s1] ss:$0 sm:$0xff]  ;;  %v439_v34 = vmov 2475754826   ;;  %v440_v36 = vmov 2131351028  }
  0x29   :  { %v43_v1 = vshrl.u32 %v42_v0, 7  ;;  %v441_v38 = vmov 2102212464   ;;  %v442_v40 = vmov 920167782   ;;  %s444_s1 = smov [#allocation7]  }
  0x2a   :  { %v443_v47 = vmov 1326507024   ;;  %s312_s2 = sshll.u32 %s444_s1, 4  ;;  %s313_s2 = int_to_ptr.vmem [resolvable:$true] %s312_s2 }
  0x2b   :  { %v52_v2 = vand.u32 7, %v43_v1  ;;  %v44_v3 = vadd.s32 8, %v43_v1  ;;  %s406_s13 = scalar_lea.vmem %s313_s2, 256  ;;  %p411_p3 = scmp.lt.s32.totalorder %s313_s2, %s313_s2 }
  0x2c   :  { %p407_p2 = scmp.ne.s32.totalorder %s313_s2, %s406_s13  ;;  %p412_p4 = scmp.lt.s32.totalorder %s406_s13, %s406_s13 }
  0x2d   :  { %v72_v4 = vcvt.s32.f32 %v52_v2  ;;  %v59_v5 = vand.u32 7, %v44_v3 }
  0x2e   :  { %p413_p5 = por %p412_p4, %p411_p3 }
  0x2f   :  { %v81_v8 = vmul.f32 %v325_v6, %v72_v4  ;;  %v73_v9 = vcvt.s32.f32 %v59_v5 }
  0x30   :  { %p414_p6 = pnand %p413_p5, %p407_p2 }
  0x31   :  { %v502_v10 = vadd.f32 %v326_v7, %v81_v8  ;;  %v82_v11 = vmul.f32 %v325_v6, %v73_v9 }
  0x33   :  { %v92_v12 = vand.u32 2147483647, %v502_v10  ;;  %v95_v13 = vand.u32 2139095040, %v502_v10  ;;  %v506_v14 = vadd.f32 %v326_v7, %v82_v11  ;;  %vm94_vm14 = vcmp.lt.s32.totalorder %v502_v10, 0 }
  0x35   :  { %v96_v15 = vshrl.u32 %v95_v13, 23  ;;  %v99_v16 = vand.u32 8388607, %v92_v12  ;;  %v196_v17 = vand.u32 2147483647, %v506_v14  ;;  %v199_v18 = vand.u32 2139095040, %v506_v14 }
  0x36   :  { %vm93_vm15 = vcmp.le.f32.partialorder %v92_v12, 0.7853982 }
  0x37   :  { %v327_v19 = vadd.s32 4294967169, %v96_v15  ;;  %v200_v20 = vshrl.u32 %v199_v18, 23  ;;  %v100_v22 = vor.u32 8388608, %v99_v16  ;;  %v514_v24 = vand.u32 8388607, %v196_v17 }
  0x39   :  { %v102_v21 = vadd.s32 1, %v327_v19  ;;  %v331_v23 = vadd.s32 4294967169, %v200_v20  ;;  %v516_v29 = vshll.u32 %v100_v22, 8  ;;  %v204_v30 = vor.u32 8388608, %v514_v24 }
  0x3b   :  { %vm103_vm0 = vcmp.gt.s32.totalorder %v102_v21, 0  ;;  %v206_v26 = vadd.s32 1, %v331_v23 }
  0x3c   :  { %v104_v25 = vsel %vm103_vm0, %v102_v21, 0  ;;  %vm198_vm0 = vcmp.lt.s32.totalorder %v506_v14, 0 }
  0x3d   :  { %v105_v27 = vshrl.u32 %v104_v25, 5  ;;  %v106_v28 = vand.u32 31, %v104_v25  ;;  %vm207_vm1 = vcmp.gt.s32.totalorder %v206_v26, 0 }
  0x3e   :  { %v208_v52 = vsel %vm207_vm1, %v206_v26, 0  ;;  %vm567_vm1 = vcmp.le.f32.partialorder %v196_v17, 0.7853982 }
  0x3f   :  { %v107_v31 = vsub.s32 32, %v106_v28  ;;  %v109_v33 = vshll.u32 %v438_v32, %v106_v28  ;;  %v112_v35 = vshll.u32 %v439_v34, %v106_v28  ;;  %v115_v37 = vshll.u32 %v440_v36, %v106_v28 }
  0x40   :  { %v118_v39 = vshll.u32 %v441_v38, %v106_v28  ;;  %v121_v41 = vshll.u32 %v442_v40, %v106_v28  ;;  %vm124_vm2 = vcmp.lt.s32.totalorder %v105_v27, 1  ;;  %vm125_vm3 = vcmp.lt.s32.totalorder %v105_v27, 2 }
  0x41   :  { %v108_v42 = vshrl.u32 %v438_v32, %v107_v31  ;;  %v110_v43 = vshrl.u32 %v439_v34, %v107_v31  ;;  %v113_v44 = vshrl.u32 %v440_v36, %v107_v31  ;;  %v116_v45 = vshrl.u32 %v441_v38, %v107_v31 }
  0x42   :  { %v119_v46 = vshrl.u32 %v442_v40, %v107_v31  ;;  %v122_v48 = vshrl.u32 %v443_v47, %v107_v31  ;;  %vm126_vm4 = vcmp.lt.s32.totalorder %v105_v27, 3  ;;  %vm127_vm5 = vcmp.lt.s32.totalorder %v105_v27, 4 }
  0x43   :  { %v111_v49 = vor.u32 %v110_v43, %v109_v33  ;;  %v114_v50 = vor.u32 %v113_v44, %v112_v35  ;;  %v117_v51 = vor.u32 %v116_v45, %v115_v37  ;;  %v209_v55 = vshrl.u32 %v208_v52, 5 }
  0x44   :  { %v120_v53 = vor.u32 %v119_v46, %v118_v39  ;;  %v123_v54 = vor.u32 %v122_v48, %v121_v41  ;;  %v210_v56 = vand.u32 31, %v208_v52 }
  0x45   :  { %v128_v57 = vsel %vm124_vm2, %v108_v42, %v111_v49  ;;  %v129_v58 = vsel %vm127_vm5, %v117_v51, 2102212464  ;;  %v132_v59 = vsel %vm124_vm2, %v111_v49, %v114_v50  ;;  %v136_v60 = vsel %vm124_vm2, %v114_v50, %v117_v51 }
  0x46   :  { %v130_v61 = vsel %vm126_vm4, %v114_v50, %v129_v58  ;;  %v133_v62 = vsel %vm127_vm5, %v120_v53, 920167782  ;;  %v137_v63 = vsel %vm127_vm5, %v123_v54, 1326507024  ;;  %v211_v0 = vsub.s32 32, %v210_v56 }
  0x47   :  { %v131_v1 = vsel %vm125_vm3, %v128_v57, %v130_v61  ;;  %v134_v2 = vsel %vm126_vm4, %v117_v51, %v133_v62  ;;  %v138_v3 = vsel %vm126_vm4, %v120_v53, %v137_v63  ;;  %v213_v4 = vshll.u32 %v438_v32, %v210_v56 }
  0x48   :  { %v135_v5 = vsel %vm125_vm3, %v132_v59, %v134_v2  ;;  %v139_v6 = vsel %vm125_vm3, %v136_v60, %v138_v3  ;;  %v147_v7 = vmul.u32 %v516_v29, %v131_v1  ;;  %v212_v8 = vshrl.u32 %v438_v32, %v211_v0 }
  0x49   :  { %v531_v9 = vmul.u32.u64.low %v516_v29, %v139_v6  ;;  %v532_v11 = vmul.u32.u64.high %v516_v29, %v139_v6, %v531_v9  ;;  %v535_v13 = vmul.u32.u64.low %v516_v29, %v135_v5  ;;  %v536_v15 = vmul.u32.u64.high %v516_v29, %v135_v5, %v535_v13 }
  0x4a   :  { %v214_v16 = vshrl.u32 %v439_v34, %v211_v0  ;;  %v216_v18 = vshll.u32 %v439_v34, %v210_v56  ;;  %v217_v19 = vshrl.u32 %v440_v36, %v211_v0  ;;  %v219_v20 = vshll.u32 %v440_v36, %v210_v56 }
  0x4b   :  { %v220_v21 = vshrl.u32 %v441_v38, %v211_v0  ;;  %v222_v22 = vshll.u32 %v441_v38, %v210_v56  ;;  %v223_v23 = vshrl.u32 %v442_v40, %v211_v0  ;;  %v225_v25 = vshll.u32 %v442_v40, %v210_v56 }
  0x4c   :  { %v215_v26 = vor.u32 %v214_v16, %v213_v4  ;;  %v218_v27 = vor.u32 %v217_v19, %v216_v18  ;;  %v226_v28 = vshrl.u32 %v443_v47, %v211_v0  ;;  %vm228_vm6 = vcmp.lt.s32.totalorder %v209_v55, 1 }
  0x4d   :  { %vm149_vm7 = vc.u32 %v532_v11, %v535_v13  ;;  %v150_v31 = vadd.s32 1, %v536_v15  ;;  %v221_v32 = vor.u32 %v220_v21, %v219_v20  ;;  %v244_v29 = vshll.u32 %v204_v30, 8 }
  0x4e   :  { %v224_v33 = vor.u32 %v223_v23, %v222_v22  ;;  %v227_v34 = vor.u32 %v226_v28, %v225_v25  ;;  %vm229_vm8 = vcmp.lt.s32.totalorder %v209_v55, 2  ;;  %vm230_vm9 = vcmp.lt.s32.totalorder %v209_v55, 3 }
  0x4f   :  { %v151_v35 = vsel %vm149_vm7, %v150_v31, %v536_v15  ;;  %vm231_vm10 = vcmp.lt.s32.totalorder %v209_v55, 4  ;;  %v232_v36 = vsel %vm228_vm6, %v212_v8, %v215_v26  ;;  %v236_v37 = vsel %vm228_vm6, %v215_v26, %v218_v27 }
  0x50   :  { %v152_v38 = vadd.s32 %v151_v35, %v147_v7  ;;  %v233_v39 = vsel %vm231_vm10, %v221_v32, 2102212464  ;;  %v237_v40 = vsel %vm231_vm10, %v224_v33, 920167782  ;;  %v240_v41 = vsel %vm228_vm6, %v218_v27, %v221_v32 }
  0x51   :  { %v234_v42 = vsel %vm230_vm9, %v218_v27, %v233_v39  ;;  %v238_v43 = vsel %vm230_vm9, %v221_v32, %v237_v40  ;;  %v241_v24 = vsel %vm231_vm10, %v227_v34, 1326507024  ;;  %v148_v2 = vadd.s32 %v535_v13, %v532_v11 }
  0x52   :  { %v153_v30 = vadd.s32 536870912, %v152_v38  ;;  %v239_v44 = vsel %vm229_vm8, %v236_v37, %v238_v43  ;;  %v242_v45 = vsel %vm230_vm9, %v224_v33, %v241_v24  ;;  %v235_v46 = vsel %vm229_vm8, %v232_v36, %v234_v42 }
  0x53   :  { %v243_v47 = vsel %vm229_vm8, %v240_v41, %v242_v45  ;;  %v549_v48 = vmul.u32.u64.low %v244_v29, %v239_v44  ;;  %v550_v49 = vmul.u32.u64.high %v244_v29, %v239_v44, %v549_v48  ;;  %v251_v54 = vmul.u32 %v244_v29, %v235_v46 }
  0x54   :  { %v154_v50 = vshrl.u32 %v153_v30, 30  ;;  %v552_v51 = vmul.u32.u64.low %v244_v29, %v243_v47  ;;  %v553_v52 = vmul.u32.u64.high %v244_v29, %v243_v47, %v552_v51  ;;  %vm184_vm5 = vweird.f32 %v502_v10 }
  0x55   :  { %v254_v56 = vadd.s32 1, %v550_v49  ;;  %vm304_vm6 = vcmask 261120   ;;  %vm288_vm10 = vweird.f32 %v506_v14 }
  0x56   :  { %v155_v53 = vshll.u32 %v154_v50, 30  ;;  %vm253_vm11 = vc.u32 %v553_v52, %v549_v48  ;;  %v178_v26 = vsub.s32 4, %v154_v50  ;;  %v252_v11 = vadd.s32 %v549_v48, %v553_v52 }
  0x57   :  { %v255_v58 = vsel %vm253_vm11, %v254_v56, %v550_v49 }
  0x58   :  { %v156_v57 = vsub.s32 %v152_v38, %v155_v53  ;;  %v256_v60 = vadd.s32 %v255_v58, %v251_v54  ;;  %v179_v33 = vsel %vm94_vm14, %v178_v26, %v154_v50  ;;  %v300_v58 = vld [vmem:[#allocation5] sm:$0xff] }
  0x59   :  { %v181_v38 = vsel %vm93_vm15, 0, %v179_v33 }
  0x5a   :  { %v158_v59 = vsub.s32 0, %v156_v57  ;;  %v257_v61 = vadd.s32 536870912, %v256_v60  ;;  %v185_v43 = vadd.s32 3, %v181_v38 }
  0x5c   :  { %v328_v55 = vmin.u32 %v158_v59, %v156_v57  ;;  %v258_v63 = vshrl.u32 %v257_v61, 30  ;;  %v186_v45 = vand.u32 3, %v185_v43 }
  0x5e   :  { %v160_v62 = vclz %v328_v55  ;;  %v259_v1 = vshll.u32 %v258_v63, 30  ;;  %v282_v30 = vsub.s32 4, %v258_v63  ;;  %vm191_vm2 = vcmp.eq.s32.totalorder %v186_v45, 2 }
  0x5f   :  { %vm188_vm3 = vcmp.eq.s32.totalorder %v186_v45, 0  ;;  %vm187_vm4 = vcmp.lt.s32.totalorder %v186_v45, 2 }
  0x60   :  { %v329_v0 = vadd.s32 4294967294, %v160_v62  ;;  %v260_v4 = vsub.s32 %v256_v60, %v259_v1  ;;  %v283_v47 = vsel %vm198_vm0, %v282_v30, %v258_v63 }
  0x61   :  { %v285_v51 = vsel %vm567_vm1, 0, %v283_v47 }
  0x62   :  { %vm330_vm12 = vcmp.lt.s32.totalorder %v329_v0, 0  ;;  %v262_v8 = vsub.s32 0, %v260_v4  ;;  %v289_v56 = vadd.s32 3, %v285_v51 }
  0x63   :  { %v163_v3 = vsel %vm330_vm12, 0, %v329_v0 }
  0x64   :  { %v164_v5 = vsub.s32 32, %v163_v3  ;;  %v165_v6 = vshll.u32 %v156_v57, %v163_v3  ;;  %v168_v7 = vsub.s32 4294967266, %v163_v3  ;;  %v332_v16 = vmin.u32 %v262_v8, %v260_v4  ;;  %v301_v3 = vld [vmem:[#allocation5 + $0x8] sm:$0xff] }
  0x65   :  { %v290_v61 = vand.u32 3, %v289_v56 }
  0x66   :  { %v166_v9 = vshrl.u32 %v148_v2, %v164_v5  ;;  %v169_v15 = vadd.s32 127, %v168_v7  ;;  %v264_v20 = vclz %v332_v16 }
  0x67   :  { %vm295_vm7 = vcmp.eq.s32.totalorder %v290_v61, 2  ;;  %vm292_vm8 = vcmp.eq.s32.totalorder %v290_v61, 0  ;;  %vm291_vm9 = vcmp.lt.s32.totalorder %v290_v61, 2 }
  0x68   :  { %v167_v18 = vor.u32 %v166_v9, %v165_v6  ;;  %v170_v19 = vshll.u32 %v169_v15, 23  ;;  %v333_v23 = vadd.s32 4294967294, %v264_v20 }
  0x6a   :  { %v171_v21 = vor.u32 4788187, %v170_v19  ;;  %v174_v22 = vcvt.s32.f32 %v167_v18  ;;  %vm334_vm13 = vcmp.lt.s32.totalorder %v333_v23, 0 }
  0x6b   :  { %v267_v27 = vsel %vm334_vm13, 0, %v333_v23 }
  0x6c   :  { %v172_v25 = vand.u32 2147483647, %v171_v21  ;;  %v268_v28 = vsub.s32 32, %v267_v27  ;;  %v269_v31 = vshll.u32 %v260_v4, %v267_v27  ;;  %v272_v32 = vsub.s32 4294967266, %v267_v27 }
  0x6e   :  { %v175_v13 = vmul.f32 %v174_v22, %v172_v25  ;;  %v270_v34 = vshrl.u32 %v252_v11, %v268_v28  ;;  %v273_v35 = vadd.s32 127, %v272_v32 }
  0x70   :  { %v176_v29 = vxor.u32 2147483648, %v175_v13  ;;  %v271_v39 = vor.u32 %v270_v34, %v269_v31  ;;  %v274_v40 = vshll.u32 %v273_v35, 23 }
  0x72   :  { %v177_v36 = vsel %vm94_vm14, %v176_v29, %v175_v13  ;;  %v275_v41 = vor.u32 4788187, %v274_v40  ;;  %v278_v42 = vcvt.s32.f32 %v271_v39 }
  0x73   :  { %v180_v37 = vsel %vm93_vm15, %v502_v10, %v177_v36 }
  0x74   :  { %354 = vcosq.f32 %v180_v37  ;;  %v276_v24 = vand.u32 2147483647, %v275_v41 }
  0x75   :  { %356 = vsinq.f32 %v180_v37 }
  0x76   :  { %v279_v44 = vmul.f32 %v278_v42, %v276_v24 }
  0x78   :  { %v280_v46 = vxor.u32 2147483648, %v279_v44 }
  0x7a   :  { %v281_v48 = vsel %vm198_vm0, %v280_v46, %v279_v44 }
  0x7b   :  { %v284_v50 = vsel %vm567_vm1, %v506_v14, %v281_v48 }
  0x7c   :  { %358 = vcosq.f32 %v284_v50 }
  0x7d   :  { %360 = vsinq.f32 %v284_v50 }
  0x7e   :  { %v355_v49 = vpop.eup %354 }
  0x7f   :  { %v357_v52 = vpop.eup %356  ;;  %v192_v53 = vxor.u32 2147483648, %v355_v49 }
  0x80   :  { %v189_v17 = vxor.u32 2147483648, %v357_v52 }
  0x81   :  { %v193_v54 = vsel %vm191_vm2, %v192_v53, %v357_v52 }
  0x82   :  { %v190_v57 = vsel %vm188_vm3, %v355_v49, %v189_v17 }
  0x83   :  { %v194_v59 = vsel %vm187_vm4, %v190_v57, %v193_v54 }
  0x84   :  { %v195_v60 = vsel %vm184_vm5, nan, %v194_v59 }
  0x85   :  { %v302_v55 = vadd.f32 %v300_v58, %v195_v60 }
  0x86   :  { %v359_v62 = vpop.eup %358 }
  0x87   :  { %305 = vst.msk [vmem:[#allocation7] sm:$0xff] %vm304_vm6, %v302_v55  ;;  %v361_v63 = vpop.eup %360  ;;  %v296_v0 = vxor.u32 2147483648, %v359_v62 }
  0x88   :  { %v293_v1 = vxor.u32 2147483648, %v361_v63 }
  0x89   :  { %v297_v10 = vsel %vm295_vm7, %v296_v0, %v361_v63 }
  0x8a   :  { %v294_v2 = vsel %vm292_vm8, %v359_v62, %v293_v1 }
  0x8b   :  { %v298_v4 = vsel %vm291_vm9, %v294_v2, %v297_v10 }
  0x8c   :  { %v299_v5 = vsel %vm288_vm10, nan, %v298_v4 }
  0x8d   :  { %v303_v6 = vadd.f32 %v301_v3, %v299_v5 }
  0x8f   :  { %306 = vst.msk [vmem:[#allocation7 + $0x8] sm:$0xff] %vm304_vm6, %v303_v6 }
  0x90   :  { %417 = shalt.err (!%p414_p6)
}
  0x91   :  { %s418_s16 = scalar_lea.hbm %s598_s3, 256 }
  0x92   :  { %p419_p7 = scmp.ne.s32.totalorder %s598_s3, %s418_s16  ;;  %p422_p8 = scmp.lt.u32.totalorder %s418_s16, %s598_s3 }
  0x94   :  { %p424_p9 = pnand %p422_p8, %p419_p7 }
  0x96   :  { %427 = shalt.err (!%p424_p9)
}
  0x97   :  { %318 = dma.vmem_to_hbm [thread:$0]  %s313_s2, 256, %s598_s3, [#allocation4], %s436_s0, %s436_s0, %s437_s8  }
  0x98   :  { %432 = dma.done.wait [#allocation4], 256  }
  0x99   :  { %433 = vsyncadd [#allocation4], 4294967040 }
  0x9a   :  { %322 = vsyncpa [#allocation3], 1 }
  0x9b   :  { %323 = vsyncpa [#allocation6], 1 }
  0x9c   :  { %324 = vsyncpa [#allocation4], 1 }

</bundles_post_ra>
